<compile_context>
chip_gen: v7x
topology: tpu7x:2x2x1
jax: 0.10.0
libtpu: 0.0.40
codegen_flags: <defaults>
</compile_context>

<pallas_src>
import functools

import jax
import jax.numpy as jnp
from jax.experimental import pallas as pl
from jax.experimental.pallas import tpu as pltpu


def _fast_recip(x):
    """1/x via EUP approximate reciprocal + one Newton-Raphson refinement.

    The approx reciprocal issues in the EUP slot (free w.r.t. the VALU); the NR
    step (two muls + a sub on a tiny (tb, 1, 1) tensor) restores ~f32 accuracy
    so results still match an exact-divide reference tightly.
    """
    r = pl.reciprocal(x, approx=True)
    return r * (2.0 - x * r)


def attention_layer_kernel(x_ref, wt_ref, b_ref, thr_ref,
                           out_ref, outf_ref, alpha_ref, *, matmul_dtype):
    tb, T, D = x_ref.shape
    H = wt_ref.shape[1]

    x = x_ref[...]                                   # (tb, T, D) f32
    x2 = x.reshape(tb * T, D)                        # merge leading dims (lane dim unchanged)

    # F.linear(out, w, bias) == out @ w.T + bias; w.T is passed in as wt (D, H).
    lhs = x2.astype(matmul_dtype)
    rhs = wt_ref[...].astype(matmul_dtype)
    f2 = jnp.dot(lhs, rhs, preferred_element_type=jnp.float32) + b_ref[...]   # (tb*T, H)
    outf_ref[...] = f2

    # Per-(batch, token) L2 norm over H, kept as (tb, T, 1) so every later
    # broadcast against x is a lane-splat over D (no cross-lane relayout).
    f3 = f2.reshape(tb, T, H)
    norms = jnp.sqrt(jnp.sum(f3 * f3, axis=2, keepdims=True))        # (tb, T, 1)

    # alpha = norm / sum_T(norm)
    a = norms * _fast_recip(jnp.sum(norms, axis=1, keepdims=True))   # (tb, T, 1)

    # relu(alpha - 0.1 / gamma); threshold precomputed on host, read from SMEM.
    a = jnp.maximum(a - thr_ref[0, 0], 0.0)

    # renormalize over T
    a = a * _fast_recip(jnp.sum(a, axis=1, keepdims=True))

    # out = alpha.unsqueeze(2).expand_as(x) * x   (lane-splat broadcast over D)
    out_ref[...] = a * x

    # alpha written once, sublane-major (tb*T, 1); wrapper reshapes to (B, T).
    alpha_ref[...] = a.reshape(tb * T, 1)


def _pick_batch_tile(B, T, D, H, *, budget_bytes=24 << 20, itemsize=4):
    """Largest divisor of B whose double-buffered working set fits the budget
    (budget chosen for v7x's 64 MiB physical / 32 MiB scoped VMEM)."""
    resident = (D * H + H) * itemsize                       # weight + bias
    tb = 1
    for cand in range(1, B + 1):
        if B % cand:
            continue
        if (cand * T) % 8 != 0 and cand != B:               # keep tiles sublane-aligned
            continue
        per_iter = cand * T * (2 * D + H + 1) * itemsize    # x + out + out_f + alpha tiles
        if resident + 2 * per_iter <= budget_bytes:         # x2 for double buffering
            tb = cand
    return tb


def attention_layer(x, w_t, bias, gamma, *, batch_tile=None,
                    matmul_dtype=jnp.float32):
    """Pallas TPU version of Attention_Layer.forward.

    Args:
      x:      (B, T, D) float32.
      w_t:    (D, H) float32 -- projection weight *pre-transposed* (store the
              parameter this way; avoids a per-call transpose op).
      bias:   (H,) float32.
      gamma:  python scalar (PyTorch uses float(gamma)).
      batch_tile: batches per grid step (must divide B); auto-picked if None.
      matmul_dtype: dtype fed to the MXU (jnp.bfloat16 halves HBM traffic of
              the dominant x stream on v6e/v7x; default f32 = exact semantics).

    Returns: (out (B,T,D), out_f (B*T,H), alpha_01 (B,T)).
    """
    B, T, D = x.shape
    H = w_t.shape[1]

    tb = batch_tile if batch_tile is not None else _pick_batch_tile(B, T, D, H)
    assert B % tb == 0, f"batch_tile={tb} must divide B={B}"
    assert (tb * T) % 8 == 0 or tb == B, "tile rows must be sublane-aligned"
    grid = (B // tb,)

    b2 = bias.reshape(1, H)                                        # metadata-only reshape
    thr = jnp.full((1, 1), 0.1 / float(gamma), dtype=jnp.float32)  # SMEM scalar

    kernel = functools.partial(attention_layer_kernel, matmul_dtype=matmul_dtype)

    out_shapes = (
        jax.ShapeDtypeStruct((B, T, D), jnp.float32),      # out
        jax.ShapeDtypeStruct((B * T, H), jnp.float32),     # out_f
        jax.ShapeDtypeStruct((B * T, 1), jnp.float32),     # alpha (reshaped to (B,T) below)
    )

    cost = pl.CostEstimate(
        flops=2 * B * T * D * H + 6 * B * T * H + 10 * B * T * D,
        transcendentals=B * T + 4 * (B // tb),
        bytes_accessed=4 * (2 * B * T * D + D * H + H + B * T * H + B * T),
    )

    fn = pl.pallas_call(
        kernel,
        grid=grid,
        in_specs=[
            pl.BlockSpec((tb, T, D), lambda i: (i, 0, 0)),         # x tile (pipelined)
            pl.BlockSpec((D, H), lambda i: (0, 0)),                # w_t, VMEM-resident
            pl.BlockSpec((1, H), lambda i: (0, 0)),                # bias, VMEM-resident
            pl.BlockSpec(memory_space=pltpu.MemorySpace.SMEM),     # thr scalar
        ],
        out_specs=(
            pl.BlockSpec((tb, T, D), lambda i: (i, 0, 0)),         # out tile
            pl.BlockSpec((tb * T, H), lambda i: (i, 0)),           # out_f tile
            pl.BlockSpec((tb * T, 1), lambda i: (i, 0)),           # alpha tile
        ),
        out_shape=out_shapes,
        compiler_params=pltpu.CompilerParams(
            dimension_semantics=("parallel",),     # shard batch tiles across TCs (v7x)
            vmem_limit_bytes=32 * 1024 * 1024,     # safe on v5e/v6e/v7x
        ),
        cost_estimate=cost,
    )
    out, out_f, alpha_flat = fn(x, w_t, b2, thr)
    return out, out_f, alpha_flat.reshape(B, T)


def reference(x, w, bias, gamma):
    B, T, D = x.shape
    out_f = x.reshape(B * T, D) @ w.T + bias
    f3 = out_f.reshape(B, T, -1)
    n = jnp.sqrt(jnp.sum(f3 ** 2, axis=2))
    a = n / jnp.sum(n, axis=1, keepdims=True)
    a = jnp.maximum(a - 0.1 / float(gamma), 0.0)
    a = a / jnp.sum(a, axis=1, keepdims=True)
    return a[:, :, None] * x, out_f, a


if __name__ == "__main__":
    B, T, D, H = 4, 8, 32, 32
    gamma = 2.0

    key = jax.random.PRNGKey(0)
    kx, kw, kb = jax.random.split(key, 3)
    x = jax.random.normal(kx, (B, T, D), dtype=jnp.float32)
    # Synthetic parameters; torch stores w as (H, D) -- we keep the transposed
    # copy (D, H) as the stored parameter so no per-call transpose is needed.
    w = jax.random.normal(kw, (H, D), dtype=jnp.float32) * 0.1
    bias = jax.random.normal(kb, (H,), dtype=jnp.float32) * 0.01
    w_t = jnp.asarray(w.T)   # done once at "parameter creation" time

    out, out_f, alpha_01 = attention_layer(x, w_t, bias, gamma, batch_tile=2)
    jax.block_until_ready((out, out_f, alpha_01))

    ref_out, ref_out_f, ref_alpha = reference(x, w, bias, gamma)
    assert out.shape == (B, T, D) and out_f.shape == (B * T, H) and alpha_01.shape == (B, T)
    # out_f does not touch the approximate reciprocal -> tight tolerance.
    assert jnp.allclose(out_f, ref_out_f, rtol=1e-5, atol=1e-5)
    # alpha / out go through approx-reciprocal + Newton normalization.
    assert jnp.allclose(alpha_01, ref_alpha, rtol=1e-3, atol=1e-4)
    assert jnp.allclose(out, ref_out, rtol=1e-3, atol=1e-4)

    print("KERNEL_OK")
</pallas_src>

<mosaic_0001>
module attributes {stable_mosaic.version = 11 : i64} {
  func.func @attention_layer_kernel(%arg0: i32, %arg1: memref<2x8x32xf32, #tpu.memory_space<vmem>>, %arg2: memref<32x32xf32, #tpu.memory_space<vmem>>, %arg3: memref<1x32xf32, #tpu.memory_space<vmem>>, %arg4: memref<1x1xf32, #tpu.memory_space<smem>>, %arg5: memref<2x8x32xf32, #tpu.memory_space<vmem>>, %arg6: memref<16x32xf32, #tpu.memory_space<vmem>>, %arg7: memref<16x1xf32, #tpu.memory_space<vmem>>) attributes {dimension_semantics = [#tpu.dimension_semantics<parallel>], iteration_bounds = array<i64: 2>, scalar_prefetch = 0 : i64, scratch_operands = 0 : i64, tpu.core_type = #tpu.core_type<tc>, window_params = [{transform_indices = @transform_0, window_bounds = array<i64: 2, 8, 32>}, {pipeline_mode = #tpu.pipeline_mode<synchronous>, transform_indices = @transform_1, window_bounds = array<i64: 32, 32>}, {pipeline_mode = #tpu.pipeline_mode<synchronous>, transform_indices = @transform_2, window_bounds = array<i64: 1, 32>}, {transform_indices = @transform_3, window_bounds = array<i64: 1, 1>}, {transform_indices = @transform_4, window_bounds = array<i64: 2, 8, 32>}, {transform_indices = @transform_5, window_bounds = array<i64: 16, 32>}, {transform_indices = @transform_6, window_bounds = array<i64: 16, 1>}]} {
    %c0 = arith.constant 0 : index
    %c0_0 = arith.constant 0 : index
    %c0_1 = arith.constant 0 : index
    %0 = vector.load %arg1[%c0, %c0_0, %c0_1] : memref<2x8x32xf32, #tpu.memory_space<vmem>>, vector<2x8x32xf32>
    %1 = vector.shape_cast %0 : vector<2x8x32xf32> to vector<16x32xf32>
    %c0_2 = arith.constant 0 : index
    %c0_3 = arith.constant 0 : index
    %2 = vector.load %arg2[%c0_2, %c0_3] : memref<32x32xf32, #tpu.memory_space<vmem>>, vector<32x32xf32>
    %cst = arith.constant dense<0.000000e+00> : vector<16x32xf32>
    %3 = tpu.matmul %1, %2, %cst {dimension_numbers = #tpu.dot_dimension_numbers<[1], [0], [0], [1], [0, 0, 1, 1], [], []>} : vector<16x32xf32>, vector<32x32xf32>, vector<16x32xf32> -> vector<16x32xf32>
    %c0_4 = arith.constant 0 : index
    %c0_5 = arith.constant 0 : index
    %4 = vector.load %arg3[%c0_4, %c0_5] : memref<1x32xf32, #tpu.memory_space<vmem>>, vector<1x32xf32>
    %5 = vector.broadcast %4 : vector<1x32xf32> to vector<16x32xf32>
    %6 = arith.addf %3, %5 : vector<16x32xf32>
    %c0_6 = arith.constant 0 : index
    %c0_7 = arith.constant 0 : index
    %7 = vector.load %arg6[%c0_6, %c0_7] : memref<16x32xf32, #tpu.memory_space<vmem>>, vector<16x32xf32>
    tpu.vector_store %arg6[%c0_6, %c0_7], %6 {strides = array<i32>} : memref<16x32xf32, #tpu.memory_space<vmem>>, vector<16x32xf32>,
    %8 = vector.shape_cast %6 : vector<16x32xf32> to vector<2x8x32xf32>
    %9 = arith.mulf %8, %8 : vector<2x8x32xf32>
    %cst_8 = arith.constant dense<0.000000e+00> : vector<2x8xf32>
    %10 = vector.multi_reduction <add>, %9, %cst_8 [2] : vector<2x8x32xf32> to vector<2x8xf32>
    %11 = vector.shape_cast %10 : vector<2x8xf32> to vector<2x8x1xf32>
    %12 = math.sqrt %11 : vector<2x8x1xf32>
    %cst_9 = arith.constant dense<0.000000e+00> : vector<2x1xf32>
    %13 = vector.multi_reduction <add>, %12, %cst_9 [1] : vector<2x8x1xf32> to vector<2x1xf32>
    %14 = vector.shape_cast %13 : vector<2x1xf32> to vector<2x1x1xf32>
    %15 = tpu.reciprocal %14 {approx = true} : vector<2x1x1xf32> -> vector<2x1x1xf32>
    %16 = arith.mulf %14, %15 : vector<2x1x1xf32>
    %cst_10 = arith.constant 2.000000e+00 : f32
    %17 = vector.broadcast %cst_10 : f32 to vector<2x1x1xf32>
    %18 = arith.subf %17, %16 : vector<2x1x1xf32>
    %19 = arith.mulf %15, %18 : vector<2x1x1xf32>
    %20 = vector.broadcast %19 : vector<2x1x1xf32> to vector<2x8x1xf32>
    %21 = arith.mulf %12, %20 : vector<2x8x1xf32>
    %c0_11 = arith.constant 0 : index
    %c0_12 = arith.constant 0 : index
    %22 = memref.load %arg4[%c0_11, %c0_12] : memref<1x1xf32, #tpu.memory_space<smem>>
    %23 = vector.broadcast %22 : f32 to vector<2x8x1xf32>
    %24 = arith.subf %21, %23 : vector<2x8x1xf32>
    %cst_13 = arith.constant 0.000000e+00 : f32
    %25 = vector.broadcast %cst_13 : f32 to vector<2x8x1xf32>
    %26 = arith.maximumf %24, %25 : vector<2x8x1xf32>
    %cst_14 = arith.constant dense<0.000000e+00> : vector<2x1xf32>
    %27 = vector.multi_reduction <add>, %26, %cst_14 [1] : vector<2x8x1xf32> to vector<2x1xf32>
    %28 = vector.shape_cast %27 : vector<2x1xf32> to vector<2x1x1xf32>
    %29 = tpu.reciprocal %28 {approx = true} : vector<2x1x1xf32> -> vector<2x1x1xf32>
    %30 = arith.mulf %28, %29 : vector<2x1x1xf32>
    %cst_15 = arith.constant 2.000000e+00 : f32
    %31 = vector.broadcast %cst_15 : f32 to vector<2x1x1xf32>
    %32 = arith.subf %31, %30 : vector<2x1x1xf32>
    %33 = arith.mulf %29, %32 : vector<2x1x1xf32>
    %34 = vector.broadcast %33 : vector<2x1x1xf32> to vector<2x8x1xf32>
    %35 = arith.mulf %26, %34 : vector<2x8x1xf32>
    %36 = vector.broadcast %35 : vector<2x8x1xf32> to vector<2x8x32xf32>
    %37 = arith.mulf %36, %0 : vector<2x8x32xf32>
    %c0_16 = arith.constant 0 : index
    %c0_17 = arith.constant 0 : index
    %c0_18 = arith.constant 0 : index
    %38 = vector.load %arg5[%c0_16, %c0_17, %c0_18] : memref<2x8x32xf32, #tpu.memory_space<vmem>>, vector<2x8x32xf32>
    tpu.vector_store %arg5[%c0_16, %c0_17, %c0_18], %37 {strides = array<i32>} : memref<2x8x32xf32, #tpu.memory_space<vmem>>, vector<2x8x32xf32>,
    %39 = vector.shape_cast %35 : vector<2x8x1xf32> to vector<16x1xf32>
    %c0_19 = arith.constant 0 : index
    %c0_20 = arith.constant 0 : index
    %40 = vector.load %arg7[%c0_19, %c0_20] : memref<16x1xf32, #tpu.memory_space<vmem>>, vector<16x1xf32>
    tpu.vector_store %arg7[%c0_19, %c0_20], %39 {strides = array<i32>} : memref<16x1xf32, #tpu.memory_space<vmem>>, vector<16x1xf32>,
    return
  }
  func.func @transform_0(%arg0: i32) -> (i32, i32, i32) {
    %c0_i32 = arith.constant 0 : i32
    %c0_i32_0 = arith.constant 0 : i32
    %c0_i32_1 = arith.constant 0 : i32
    return %arg0, %c0_i32, %c0_i32_0 : i32, i32, i32
  }
  func.func @transform_1(%arg0: i32) -> (i32, i32) {
    %c0_i32 = arith.constant 0 : i32
    %c0_i32_0 = arith.constant 0 : i32
    %c0_i32_1 = arith.constant 0 : i32
    return %c0_i32, %c0_i32_0 : i32, i32
  }
  func.func @transform_2(%arg0: i32) -> (i32, i32) {
    %c0_i32 = arith.constant 0 : i32
    %c0_i32_0 = arith.constant 0 : i32
    %c0_i32_1 = arith.constant 0 : i32
    return %c0_i32, %c0_i32_0 : i32, i32
  }
  func.func @transform_3(%arg0: i32) -> (i32, i32) {
    %c0_i32 = arith.constant 0 : i32
    %c0_i32_0 = arith.constant 0 : i32
    %c0_i32_1 = arith.constant 0 : i32
    return %c0_i32, %c0_i32_0 : i32, i32
  }
  func.func @transform_4(%arg0: i32) -> (i32, i32, i32) {
    %c0_i32 = arith.constant 0 : i32
    %c0_i32_0 = arith.constant 0 : i32
    %c0_i32_1 = arith.constant 0 : i32
    return %arg0, %c0_i32, %c0_i32_0 : i32, i32, i32
  }
  func.func @transform_5(%arg0: i32) -> (i32, i32) {
    %c0_i32 = arith.constant 0 : i32
    %c0_i32_0 = arith.constant 0 : i32
    return %arg0, %c0_i32 : i32, i32
  }
  func.func @transform_6(%arg0: i32) -> (i32, i32) {
    %c0_i32 = arith.constant 0 : i32
    %c0_i32_0 = arith.constant 0 : i32
    return %arg0, %c0_i32 : i32, i32
  }
}

</mosaic_0001>

<bundles_post_ra>
// kernel: tpu_custom_call.1
= control target key start
LH: loop header
LB: loop body
LE: loop exit
PB: predicated region body
PF: predicated region fallthrough
CT: control target
= control target key end

     0   :  { %s1288_s0 = inlined_call_operand.hbm [shape: f32[4,8,32], index: 0, kind: input, shape index: {}]   ;;  %s1289_s1 = inlined_call_operand.hbm [shape: f32[32,32], index: 1, kind: input, shape index: {}]   ;;  %s1290_s2 = inlined_call_operand.vmem [shape: f32[1,32], index: 2, kind: input, shape index: {}]   ;;  %s1291_s3 = inlined_call_operand.<no memory space> [shape: f32[1,1], index: 3, kind: input, shape index: {}]   ;;  %s1292_s4 = inlined_call_operand.hbm [shape: f32[4,8,32], index: 4, kind: output, shape index: {0}]   ;;  %s1293_s5 = inlined_call_operand.hbm [shape: f32[32,32], index: 5, kind: output, shape index: {1}]   ;;  %s1294_s6 = inlined_call_operand.vmem [shape: f32[32,1], index: 6, kind: output, shape index: {2}]  }
   0x1   :  { %12 = sst [smem:[#allocation2]] %s1291_s3 }
   0x2   :  { %13 = vsyncpa [#allocation4], 0 }
   0x3   :  { %15 = vsyncpa [#allocation4 + $0x1], 0 }
   0x4   :  { %16 = vsyncpa [#allocation7], 0 }
   0x5   :  { %17 = vsyncpa [#allocation5], 0 }
   0x6   :  { %19 = vsyncpa [#allocation5 + $0x1], 0 }
   0x7   :  { %20 = vsyncpa [#allocation10], 0 }
   0x8   :  { %22 = vsyncpa [#allocation10 + $0x1], 0  ;;  %s1012_s23 = smov 0   ;;  %s1014_s24 = smov 0  }
   0x9   :  { %s1016_s25 = smov 0   ;;  %s1018_s26 = smov 0  }
   0xa LB: > { %s1033_s3 = sadd.s32 4294967295, %s964_s26   ;;  %s673_s27 = sadd.s32 4294967294, %s964_s26   ;;  %s964_s26 = sphi %s1018_s26, %s1314_s26   ;;  %s960_s25 = sphi %s1016_s25, %s1313_s25   ;;  %s956_s24 = sphi %s1014_s24, %s1312_s24   ;;  %s952_s23 = sphi %s1012_s23, %s1311_s23  }
   0xb   : > { %p48_p0 = scmp.ne.s32.totalorder %s956_s24, %s952_s23  ;;  %p1295_p1 = scmp.eq.s32.totalorder %s1033_s3, 0 }
   0xc   : > { %p141_p3 = scmp.eq.s32.totalorder %s673_s27, 1  ;;  %p674_p5 = scmp.ge.s32.totalorder %s964_s26, 1 }
   0xd   : > { %p1042_p4 = por %p1295_p1, %p48_p0  ;;  %p200_p7 = scmp.lt.s32.totalorder %s964_s26, 3 }
   0xe   : > { %p1047_p6 = por %p141_p3, %p48_p0  ;;  %s966_s7 = smov [#allocation6]  }
   0xf   : > { %s1298_s28 = scalar_select %p1042_p4, 1, 0 }
  0x10   : > { %s1299_s29 = scalar_select %p1047_p6, 1, 0 }
  0x11   : > { %p1052_p8 = pnand %p674_p5, %p200_p7  ;;  %s212_s8 = sshll.u32 %s966_s7, 4  ;;  %s1056_s8 = int_to_ptr.vmem [resolvable:$true] %s212_s8 }
  0x12   : > { %s1068_s10 = sadd.s32 1, %s964_s26   ;;  %s35_s11 = sadd.s32 1, %s960_s25 }
  0x13   : > { %s1300_s30 = scalar_select %p1052_p8, 1, 0 }
  0x14   : > { %p736_p9 = pneg %p1052_p8  ;;  %s32_s12 = ssub.s32 %s964_s26, %s1068_s10 }
  0x15   : > { %s804_s15 = scalar_lea.hbm %s1289_s1, 512 }
  0x16   : > { %p1063_p11 = pnand %p736_p9, %p1295_p1  ;;  %p805_p12 = scmp.ne.s32.totalorder %s1289_s1, %s804_s15 }
  0x17   : > { %p811_p5 = scmp.lt.u32.totalorder %s804_s15, %s1289_s1 }
  0x18   : > { %p806_p13 = pneg %p1063_p11 }
  0x1a   : > { %p807_p0 = pnand %p806_p13, %p805_p12 }
  0x1c   : > { %p808_p3 = pneg %p807_p0 }
  0x1e   : > { %p813_p7 = pnand %p811_p5, %p808_p3 }
  0x20   : > { %816 = shalt.err (!%p813_p7)
}
  0x21   : > { %s817_s20 = scalar_lea.vmem %s1056_s8, 512  ;;  %p825_p2 = scmp.lt.s32.totalorder %s1056_s8, %s1056_s8 }
  0x22   : > { %p818_p9 = scmp.ne.s32.totalorder %s1056_s8, %s817_s20  ;;  %p826_p6 = scmp.lt.s32.totalorder %s817_s20, %s817_s20 }
  0x24   : > { %p820_p10 = pnand %p818_p9, %p806_p13  ;;  %p827_p4 = por %p826_p6, %p825_p2 }
  0x26   : > { %p821_p1 = pneg %p820_p10 }
  0x28   : > { %p828_p8 = pnand %p827_p4, %p821_p1 }
  0x2a   : > { %831 = shalt.err (!%p828_p8)
}
  0x2b   : > { %s967_s21 = smov 128   ;;  %s968_s22 = smov 8  }
  0x2c   : > { %739 = dma.hbm_to_vmem [thread:$0]  (!%p1063_p11), %s1289_s1, 512, %s1056_s8, [#allocation7], %s967_s21, %s967_s21, %s968_s22  }
  0x2d   : > { %p33_p1 = scmp.eq.s32.totalorder %s32_s12, 0  ;;  %p42_p2 = scmp.ne.s32.totalorder %s960_s25, %s956_s24 }
  0x2e   : > { %p43_p4 = scmp.eq.s32.totalorder %s964_s26, 0  ;;  %p752_p6 = scmp.lt.s32.totalorder %s964_s26, 2 }
  0x2f   : > { %s1102_s13 = scalar_select %p33_p1, %s960_s25, %s35_s11  }
  0x30   : > { %p44_p8 = por %p43_p4, %p42_p2  ;;  %p1302_p10 = scmp.eq.s32.totalorder %s1033_s3, 1 }
  0x31   : > { %s232_s9 = sand.u32 1, %s960_s25   ;;  %s698_s15 = sshll.u32 %s964_s26, 8 }
  0x32   : > { %p1106_p12 = por %p1302_p10, %p42_p2  ;;  %s677_s16 = sshll.u32 %s232_s9, 4 }
  0x33   : > { %s1115_s19 = scalar_lea.hbm %s1288_s0, %s698_s15  ;;  %s236_s8 = scalar_lea.vmem [#allocation3], %s677_s16 }
  0x34   : > { %s243_s11 = sshll.u32 %s236_s8, 4  ;;  %p1117_p11 = pnand %p752_p6, %p44_p8  ;;  %s1121_s11 = int_to_ptr.vmem [resolvable:$true] %s243_s11 }
  0x35   : > { %s1123_s20 = scalar_lea.sflag [#allocation4], %s232_s9  ;;  %s832_s27 = scalar_lea.hbm %s1115_s19, 256 }
  0x36   : > { %p833_p13 = scmp.ne.s32.totalorder %s1115_s19, %s832_s27  ;;  %p834_p0 = pneg %p1117_p11 }
  0x37   : > { %s837_s16 = scalar_lea.hbm %s1288_s0, 512  ;;  %p838_p7 = scmp.lt.u32.totalorder %s1115_s19, %s1288_s0 }
  0x38   : > { %p835_p3 = pnand %p834_p0, %p833_p13  ;;  %p839_p9 = scmp.lt.u32.totalorder %s837_s16, %s832_s27 }
  0x39   : > { %p841_p2 = scmp.lt.u32.totalorder %s832_s27, %s1115_s19 }
  0x3a   : > { %p836_p5 = pneg %p835_p3  ;;  %p840_p1 = por %p839_p9, %p838_p7 }
  0x3c   : > { %p842_p4 = por %p841_p2, %p840_p1 }
  0x3e   : > { %p843_p6 = pnand %p842_p4, %p836_p5 }
  0x40   : > { %846 = shalt.err (!%p843_p6)
}
  0x41   : > { %s847_s9 = scalar_lea.vmem %s1121_s11, 256  ;;  %s969_s8 = smov [#allocation3]  }
  0x42   : > { %p848_p8 = scmp.ne.s32.totalorder %s1121_s11, %s847_s9  ;;  %s852_s7 = sshll.u32 %s969_s8, 4  ;;  %s853_s7 = int_to_ptr.vmem [resolvable:$false] %s852_s7 }
  0x43   : > { %s854_s15 = scalar_lea.vmem %s853_s7, 512  ;;  %p855_p3 = scmp.lt.s32.totalorder %s1121_s11, %s853_s7 }
  0x44   : > { %p850_p10 = pnand %p848_p8, %p834_p0  ;;  %p856_p7 = scmp.lt.s32.totalorder %s854_s15, %s847_s9 }
  0x46   : > { %p851_p13 = pneg %p850_p10  ;;  %p857_p9 = por %p856_p7, %p855_p3 }
  0x48   : > { %p858_p1 = pnand %p857_p9, %p851_p13 }
  0x4a   : > { %861 = shalt.err (!%p858_p1)
}
  0x4b   : > { %743 = dma.hbm_to_vmem [thread:$0]  (!%p1117_p11), %s1115_s19, 256, %s1121_s11, %s1123_s20, %s967_s21, %s967_s21, %s968_s22  }
  0x4c   : > { %p1305_p0 = scmp.ne.s32.totalorder %s1300_s30, 0 }
  0x4d   : > { %s1157_s27 = sand.u32 (!%p1305_p0), 1, %s956_s24   ;;  %p1306_p5 = scmp.ne.s32.totalorder (!%p1305_p0), %s1298_s28, 0 }
  0x4e   : > { %255 = sbr.rel (%p1305_p0) target bundleno = 561 (0x231), region = 36  ;;  %s1160_s16 = sshll.u32 (!%p1305_p0), %s1157_s27, 4 }
  0x4f   : > { %s258_s12 = scalar_lea.sflag (!%p1305_p0), [#allocation4], %s1157_s27  ;;  %s261_s17 = scalar_lea.vmem (!%p1305_p0), [#allocation3], %s1160_s16 }
  0x55   : > { %935 = dma.done.wait (%p1306_p5), %s258_s12, 256  }
  0x56   : > { %937 = vsyncadd (%p1306_p5), %s258_s12, 4294967040  ;;  %p1307_p11 = scmp.eq.s32.totalorder %s1033_s3, 0 }
  0x58   : > { %939 = dma.done.wait (%p1307_p11), [#allocation7], 512   ;;  %p1308_p2 = pmov %p1307_p11 }
  0x59   : > { %vm326_vm0 = vcmask 261120   ;;  %v315_v0 = vld [vmem:[#allocation6] sm:$0xff]  ;;  %v316_v1 = vld [vmem:[#allocation6 + $0x8] sm:$0xff]  ;;  %v317_v2 = vld [vmem:[#allocation6 + $0x10] sm:$0xff]  ;;  %s296_s21 = scalar_lea.vmem [#allocation9], %s1160_s16  ;;  %s699_s19 = sshll.u32 %s1033_s3, 8 }
  0x5a   : > { %941 = vsyncadd (%p1308_p2), [#allocation7], 4294966784  ;;  %v718_v3 = vpack.c.bf16 %v316_v1, %v315_v0  ;;  %v318_v4 = vld [vmem:[#allocation6 + $0x18] sm:$0xff]  ;;  %v1172_v5 = vld [vmem:[%s261_s17] sm:$0xff]  ;;  %s529_s22 = sshll.u32 %s296_s21, 4  ;;  %s1196_s18 = scalar_lea.hbm %s1293_s5, %s699_s19  ;;  %s1189_s22 = int_to_ptr.vmem [resolvable:$true] %s529_s22 }
  0x5b   : > { %v722_v6 = vpack.c.bf16 %v318_v4, %v317_v2  ;;  %715 = vmatprep.mubr.msk.f32.mxu0 %vm326_vm0, %v1172_v5  ;;  %v1176_v7 = vld [vmem:[%s261_s17 + $0x8] sm:$0xff]  ;;  %v687_v8 = vld [vmem:[%s1290_s2] ss:$0 sm:$0xff]  ;;  %s495_s9 = scalar_lea.sflag [#allocation10], %s1157_s27  ;;  %s862_s8 = scalar_lea.vmem %s1189_s22, 256 }
  0x5c   : > { %719 = vmatprep.subr.bf16.mxu0 %v718_v3  ;;  %p863_p4 = scmp.ne.s32.totalorder %s1189_s22, %s862_s8  ;;  %s970_s7 = smov [#allocation9]  }
  0x5d   : > { %721 = vmatpush3.bf16.msra.mxu0 %v718_v3  ;;  %s866_s15 = sshll.u32 %s970_s7, 4  ;;  %s867_s15 = int_to_ptr.vmem [resolvable:$false] %s866_s15 }
  0x5e   : > { %723 = vmatprep.subr.bf16.mxu0 %v722_v6  ;;  %p864_p6 = pnand %p863_p4, %p1106_p12  ;;  %s868_s12 = scalar_lea.vmem %s867_s15, 512 }
  0x5f   : > { %p869_p10 = scmp.lt.s32.totalorder %s1189_s22, %s867_s15  ;;  %p870_p13 = scmp.lt.s32.totalorder %s868_s12, %s862_s8 }
  0x60   : > { %p865_p8 = pneg %p864_p6 }
  0x61   : > { %725 = vmatpush3.bf16.msra.mxu0 %v722_v6  ;;  %p871_p3 = por %p870_p13, %p869_p10 }
  0x63   : > { %p872_p7 = pnand %p871_p3, %p865_p8 }
  0x64   : > { %716 = vmatmul.mubr.msk.f32.vlgmr.msra.gmra.mrb[0].mxu0 %vm326_vm0, %v1176_v7 }
 0x137   : > { %v717_v9 = vpop.f32.mrb[0].mxu0 }
 0x138   : > { %v405_v10 = vadd.f32 %v717_v9, %v687_v8  ;;  %v399_v11 = vpop.f32.mrb[1].mxu0 }
 0x139   : > { %v400_v12 = vadd.f32 %v687_v8, %v399_v11 }
 0x13a   : > { %409 = vst.msk [vmem:[%s296_s21 + $0x8] sm:$0xff] %vm326_vm0, %v405_v10  ;;  %v411_v15 = vmul.f32 %v405_v10, %v405_v10 }
 0x13b   : > { %408 = vst.msk [vmem:[%s296_s21] sm:$0xff] %vm326_vm0, %v400_v12  ;;  %v410_v13 = vmul.f32 %v400_v12, %v400_v12 }
 0x13c   : > { %v415_v16 = vsel %vm326_vm0, %v411_v15, 0.0 }
 0x13d   : > { %v412_v14 = vsel %vm326_vm0, %v410_v13, 0.0 }
 0x13e   : > { %413 = vadd.xlane.f32.xlu0 %v412_v14 }
 0x142   : > { %416 = vadd.xlane.f32.xlu0 %v415_v16 }
 0x143   : > { %875 = shalt.err (!%p872_p7)
}
 0x144   : > { %s876_s17 = scalar_lea.hbm %s1196_s18, 256  ;;  %s880_s21 = scalar_lea.hbm %s1293_s5, 512 }
 0x145   : > { %p877_p9 = scmp.ne.s32.totalorder %s1196_s18, %s876_s17  ;;  %p881_p5 = scmp.lt.u32.totalorder %s1196_s18, %s1293_s5 }
 0x146   : > { %p882_p11 = scmp.lt.u32.totalorder %s880_s21, %s876_s17  ;;  %p884_p4 = scmp.lt.u32.totalorder %s876_s17, %s1196_s18 }
 0x147   : > { %p878_p1 = pnand %p877_p9, %p1106_p12 }
 0x148   : > { %p883_p2 = por %p882_p11, %p881_p5 }
 0x149   : > { %p879_p0 = pneg %p878_p1 }
 0x14a   : > { %p885_p6 = por %p884_p4, %p883_p2 }
 0x14c   : > { %p886_p8 = pnand %p885_p6, %p879_p0 }
 0x14e   : > { %889 = shalt.err (!%p886_p8)
}
 0x14f   : > { %s971_s8 = smov 128   ;;  %s972_s7 = smov 8   ;;  %vm486_vm5 = vcmask 7168  }
 0x150   : > { %733 = dma.vmem_to_hbm [thread:$0]  (%p1106_p12), %s1189_s22, 256, %s1196_s18, %s495_s9, %s971_s8, %s971_s8, %s972_s7  }
 0x151   : > { %s454_s22 = sld [smem:[#allocation2]]  ;;  %s685_s18 = sshll.u32 %s1033_s3, 1 }
 0x152   : > { %p308_p10 = scmp.lt.s32.totalorder %s685_s18, 3  ;;  %s289_s28 = scalar_lea.vmem [#allocation8], %s1160_s16 }
 0x153   : > { %s513_s30 = sshll.u32 %s289_s28, 4  ;;  %s1238_s20 = scalar_lea.hbm %s1292_s4, %s699_s19  ;;  %s1240_s30 = int_to_ptr.vmem [resolvable:$true] %s513_s30 }
 0x154   : > { %s1316_s18 = smov (!%p308_p10, %s685_s18), 3  ;;  %s490_s16 = scalar_lea.sflag [#allocation5], %s1157_s27 }
 0x155   : > { %s686_s9 = sshll.u32 %s1316_s18, 3  ;;  %s973_s18 = smov [#allocation8]  }
 0x156   : > { %s311_s17 = scalar_lea.vmem %s1294_s6, %s686_s9  ;;  %s894_s3 = sshll.u32 %s973_s18, 4  ;;  %s895_s3 = int_to_ptr.vmem [resolvable:$false] %s894_s3 }
 0x157   : > { %v455_v47 = vstv %s454_s22  ;;  %s890_s22 = scalar_lea.vmem %s1240_s30, 256  ;;  %s896_s9 = scalar_lea.vmem %s895_s3, 512 }
 0x158   : > { %p891_p13 = scmp.ne.s32.totalorder %s1240_s30, %s890_s22  ;;  %p897_p9 = scmp.lt.s32.totalorder %s1240_s30, %s895_s3 }
 0x159   : > { %p898_p1 = scmp.lt.s32.totalorder %s896_s9, %s890_s22 }
 0x15a   : > { %p892_p3 = pnand %p891_p13, %p1106_p12 }
 0x15b   : > { %p899_p0 = por %p898_p1, %p897_p9 }
 0x15c   : > { %p893_p7 = pneg %p892_p3 }
 0x15e   : > { %p900_p5 = pnand %p899_p0, %p893_p7 }
 0x1cb   : > { %v414_v17 = vpop.xlane.xlu0 %413 }
 0x1cc   : > { %792 = vrsqrt.f32 %v414_v17  ;;  %vm420_vm1 = vcmp.eq.f32.partialorder %v414_v17, inf  ;;  %v423_v21 = vand.u32 2147483648, %v414_v17  ;;  %vm422_vm2 = vcmp.eq.f32.partialorder %v414_v17, 0.0 }
 0x1cf   : > { %v417_v18 = vpop.xlane.xlu0 %416 }
 0x1d0   : > { %794 = vrsqrt.f32 %v417_v18  ;;  %vm427_vm3 = vcmp.eq.f32.partialorder %v417_v18, inf  ;;  %v430_v27 = vand.u32 2147483648, %v417_v18  ;;  %vm429_vm4 = vcmp.eq.f32.partialorder %v417_v18, 0.0 }
 0x1d6   : > { %v793_v19 = vpop.eup %792 }
 0x1d7   : > { %v419_v20 = vmul.f32 %v793_v19, %v414_v17 }
 0x1d9   : > { %v421_v22 = vsel %vm420_vm1, %v414_v17, %v419_v20 }
 0x1da   : > { %v795_v23 = vpop.eup %794  ;;  %v424_v24 = vsel %vm422_vm2, %v423_v21, %v421_v22 }
 0x1db   : > { %v432_v25 = vrot.slane %v424_v24, 4  ;;  %v426_v26 = vmul.f32 %v795_v23, %v417_v18 }
 0x1dd   : > { %v433_v28 = vadd.f32 %v432_v25, %v424_v24  ;;  %v428_v29 = vsel %vm427_vm3, %v417_v18, %v426_v26 }
 0x1de   : > { %v431_v30 = vsel %vm429_vm4, %v430_v27, %v428_v29 }
 0x1df   : > { %v434_v31 = vrot.slane %v433_v28, 2  ;;  %v438_v32 = vrot.slane %v431_v30, 4 }
 0x1e1   : > { %v435_v33 = vadd.f32 %v434_v31, %v433_v28  ;;  %v439_v34 = vadd.f32 %v438_v32, %v431_v30 }
 0x1e3   : > { %v436_v35 = vrot.slane %v435_v33, 1  ;;  %v440_v36 = vrot.slane %v439_v34, 2 }
 0x1e5   : > { %v437_v37 = vadd.f32 %v436_v35, %v435_v33  ;;  %v441_v38 = vadd.f32 %v440_v36, %v439_v34 }
 0x1e7   : > { %796 = vrcp.f32 %v437_v37  ;;  %v442_v39 = vrot.slane %v441_v38, 1 }
 0x1e9   : > { %v443_v40 = vadd.f32 %v442_v39, %v441_v38 }
 0x1eb   : > { %798 = vrcp.f32 %v443_v40 }
 0x1f1   : > { %v797_v41 = vpop.eup %796 }
 0x1f2   : > { %v446_v42 = vmul.f32 %v797_v41, %v437_v37 }
 0x1f4   : > { %v448_v43 = vsub.f32 2.0, %v446_v42 }
 0x1f5   : > { %v799_v44 = vpop.eup %798 }
 0x1f6   : > { %v450_v45 = vmul.f32 %v797_v41, %v448_v43  ;;  %v447_v46 = vmul.f32 %v799_v44, %v443_v40 }
 0x1f8   : > { %v452_v48 = vmul.f32 %v450_v45, %v424_v24  ;;  %v449_v49 = vsub.f32 2.0, %v447_v46 }
 0x1fa   : > { %v456_v50 = vsub.f32 %v452_v48, %v455_v47  ;;  %v451_v51 = vmul.f32 %v799_v44, %v449_v49 }
 0x1fc   : > { %v458_v52 = vmax.f32 %v456_v50, 0.0  ;;  %v453_v53 = vmul.f32 %v451_v51, %v431_v30 }
 0x1fe   : > { %v460_v54 = vrot.slane %v458_v52, 4  ;;  %v457_v55 = vsub.f32 %v453_v53, %v455_v47 }
 0x200   : > { %v461_v56 = vadd.f32 %v460_v54, %v458_v52  ;;  %v459_v57 = vmax.f32 %v457_v55, 0.0 }
 0x202   : > { %v462_v58 = vrot.slane %v461_v56, 2  ;;  %v466_v59 = vrot.slane %v459_v57, 4 }
 0x204   : > { %v463_v60 = vadd.f32 %v462_v58, %v461_v56  ;;  %v467_v61 = vadd.f32 %v466_v59, %v459_v57 }
 0x206   : > { %v464_v62 = vrot.slane %v463_v60, 1  ;;  %v468_v63 = vrot.slane %v467_v61, 2 }
 0x208   : > { %v465_v0 = vadd.f32 %v464_v62, %v463_v60  ;;  %v469_v1 = vadd.f32 %v468_v63, %v467_v61 }
 0x20a   : > { %800 = vrcp.f32 %v465_v0  ;;  %v470_v2 = vrot.slane %v469_v1, 1 }
 0x20c   : > { %v471_v3 = vadd.f32 %v470_v2, %v469_v1 }
 0x20e   : > { %802 = vrcp.f32 %v471_v3 }
 0x214   : > { %v801_v4 = vpop.eup %800 }
 0x215   : > { %v474_v6 = vmul.f32 %v801_v4, %v465_v0 }
 0x217   : > { %v476_v8 = vsub.f32 2.0, %v474_v6 }
 0x218   : > { %v803_v9 = vpop.eup %802 }
 0x219   : > { %v478_v10 = vmul.f32 %v801_v4, %v476_v8  ;;  %v475_v11 = vmul.f32 %v803_v9, %v471_v3 }
 0x21b   : > { %v480_v12 = vmul.f32 %v478_v10, %v458_v52  ;;  %v477_v13 = vsub.f32 2.0, %v475_v11 }
 0x21d   : > { %487 = vst.msk [vmem:[%s311_s17] sm:$0xff] %vm486_vm5, %v480_v12  ;;  %v479_v14 = vmul.f32 %v803_v9, %v477_v13  ;;  %v482_v15 = vmul.f32 %v480_v12, %v1172_v5 }
 0x21f   : > { %v481_v16 = vmul.f32 %v479_v14, %v459_v57  ;;  %484 = vst.msk [vmem:[%s289_s28] sm:$0xff] %vm326_vm0, %v482_v15 }
 0x221   : > { %v483_v17 = vmul.f32 %v481_v16, %v1176_v7  ;;  %488 = vst.msk [vmem:[%s311_s17 + $0x8] sm:$0xff] %vm486_vm5, %v481_v16 }
 0x223   : > { %485 = vst.msk [vmem:[%s289_s28 + $0x8] sm:$0xff] %vm326_vm0, %v483_v17 }
 0x224   : > { %903 = shalt.err (!%p900_p5)
}
 0x225   : > { %s904_s19 = scalar_lea.hbm %s1238_s20, 256  ;;  %s908_s17 = scalar_lea.hbm %s1292_s4, 512 }
 0x226   : > { %p905_p11 = scmp.ne.s32.totalorder %s1238_s20, %s904_s19  ;;  %p909_p6 = scmp.lt.u32.totalorder %s1238_s20, %s1292_s4 }
 0x227   : > { %p910_p8 = scmp.lt.u32.totalorder %s908_s17, %s904_s19  ;;  %p912_p13 = scmp.lt.u32.totalorder %s904_s19, %s1238_s20 }
 0x228   : > { %p906_p2 = pnand %p905_p11, %p1106_p12 }
 0x229   : > { %p911_p10 = por %p910_p8, %p909_p6 }
 0x22a   : > { %p907_p4 = pneg %p906_p2 }
 0x22b   : > { %p913_p3 = por %p912_p13, %p911_p10 }
 0x22d   : > { %p914_p7 = pnand %p913_p3, %p907_p4 }
 0x22f   : > { %917 = shalt.err (!%p914_p7)
}
 0x230   : > { %732 = dma.vmem_to_hbm [thread:$0]  (%p1106_p12), %s1240_s30, 256, %s1238_s20, %s490_s16, %s971_s8, %s971_s8, %s972_s7  }
 0x231 PF: > { %s548_s11 = sand.u32 1, %s952_s23   ;;  %p1309_p9 = scmp.ne.s32.totalorder %s1299_s29, 0 }
 0x232   : > { %p1310_p1 = scmp.ge.s32.totalorder %s964_s26, 2  ;;  %s549_s22 = scalar_lea.sflag [#allocation5], %s548_s11 }
 0x234   : > { %p745_p0 = pnand %p1310_p1, %p1309_p9 }
 0x236   : > { %943 = dma.done.wait (!%p745_p0), %s549_s22, 256  }
 0x237   : > { %945 = vsyncadd (!%p745_p0), %s549_s22, 4294967040  ;;  %s558_s14 = scalar_lea.sflag [#allocation10], %s548_s11 }
 0x238   : > { %947 = dma.done.wait (!%p745_p0), %s558_s14, 256  }
 0x239   : > { %949 = vsyncadd (!%p745_p0), %s558_s14, 4294967040  ;;  %p25_p12 = scmp.ge.s32.totalorder %s1068_s10, 4   ;;  %s1311_s23 = smov %s956_s24 }
 0x23a   : > { %s1312_s24 = smov %s960_s25  ;;  %s1313_s25 = smov %s1102_s13 }
 0x23b   : > { %s1314_s26 = smov %s1068_s10  ;;  %27 = sbr.rel (!%p25_p12) target bundleno = 10 (0xa), region = 114 }
 0x242   :  { %571 = vsyncpa [#allocation4], 1 }
 0x243   :  { %573 = vsyncpa [#allocation4 + $0x1], 1 }
 0x244   :  { %574 = vsyncpa [#allocation7], 1 }
 0x245   :  { %575 = vsyncpa [#allocation5], 1 }
 0x246   :  { %577 = vsyncpa [#allocation5 + $0x1], 1 }
 0x247   :  { %578 = vsyncpa [#allocation10], 1 }
 0x248   :  { %580 = vsyncpa [#allocation10 + $0x1], 1 }

</bundles_post_ra>
